<compile_context>
chip_gen: v7x
topology: tpu7x:2x2x1
jax: 0.10.0
libtpu: 0.0.40
codegen_flags: <defaults>
</compile_context>

<pallas_src>
import functools

import jax
import jax.numpy as jnp
from jax.experimental import pallas as pl
from jax.experimental.pallas import tpu as pltpu


# ---------------------------------------------------------------------------
# Kernel
# ---------------------------------------------------------------------------
def _connector_kernel(x_ref, w_ref, b_ref, o_ref, acc_ref, *, k: int, inv_k: float):
    """One (batch, sequence-tile, K-tile) grid step.

    x_ref:   (1, tS_out, k, tK)    VMEM  input rows, grouped by pooling window
    w_ref:   (tK, out_pad)         VMEM  transposed (padded) weight slice
    b_ref:   (1, out_pad)          VMEM  f32 bias (padded)
    o_ref:   (1, tS_out, out_pad)  VMEM  output tile
    acc_ref: (tS_out, out_pad)     VMEM  f32 accumulator across K tiles
    """
    kk = pl.program_id(2)

    @pl.when(kk == 0)
    def _init():
        acc_ref[...] = jnp.zeros(acc_ref.shape, acc_ref.dtype)

    # AvgPool1d(k, k) BEFORE the linear layer (mean commutes with the linear
    # map): sum the k window rows with VPU adds, multiply once by 1/k.
    xb = x_ref[0]                                     # (tS_out, k, tK)
    pooled = xb[:, 0, :].astype(jnp.float32)
    for i in range(1, k):                             # k is small & static
        pooled = pooled + xb[:, i, :].astype(jnp.float32)
    pooled = (pooled * inv_k).astype(w_ref.dtype)     # (tS_out, tK)

    # MXU matmul on the k-times-smaller pooled LHS; accumulate in f32.
    acc_ref[...] += jnp.dot(pooled, w_ref[...], preferred_element_type=jnp.float32)

    @pl.when(kk == pl.num_programs(2) - 1)
    def _finalize():
        o_ref[0] = (acc_ref[...] + b_ref[...]).astype(o_ref.dtype)


# ---------------------------------------------------------------------------
# Sizing helpers
# ---------------------------------------------------------------------------
def _vmem_budget_bytes() -> int:
    """Per-TensorCore VMEM we allow the kernel to use (physical minus headroom)."""
    try:
        cap = int(pltpu.get_tpu_info().vmem_capacity_bytes)
    except Exception:
        cap = 128 << 20  # assume v5e/v6e class if the query is unavailable
    # Leave ~12-19 MiB for compiler internal scratch / temporaries:
    #   v7x (64 MiB) -> ~52 MiB;  v5e/v6e (128 MiB) -> ~108 MiB.
    return max(32 << 20, min(cap - (12 << 20), int(cap * 0.85)))


def _sublanes(dtype) -> int:
    # Packed sublanes per vreg row: f32 -> 8, bf16 -> 16, int8/fp8 -> 32.
    return max(8, 32 // jnp.dtype(dtype).itemsize)


def _pick_tile_s(S: int, k: int, per_row_bytes: int, step: int, cap_bytes: int) -> int:
    """Largest tS such that (a) tS divides S, (b) tS is a multiple of `step`
    (pooled rows stay packed-sublane aligned), and (c) the tS-scaling VMEM
    stays under cap_bytes.  Falls back to any k-multiple divisor, then S."""
    per_row_bytes = max(1, per_row_bytes)
    max_rows = max(step, cap_bytes // per_row_bytes)
    best, t = None, step
    while t <= min(S, max_rows):
        if S % t == 0:
            best = t
        t += step
    if best is not None:
        return best
    t = k
    while t <= min(S, max_rows):
        if S % t == 0:
            best = t
        t += k
    if best is not None:
        return best
    # TODO(synk): ragged last tile (pl.cdiv grid + pl.when masking) for awkward
    # S; for now take the whole sequence as one block (always legal).
    return S


def _prepare_params(weight, bias, compute_dtype):
    """Transpose + pad + cast parameters for the kernel.

    In production call this ONCE at init time (it is static per model); doing
    it per step costs an extra HBM pass over the weight."""
    out_dim, in_dim = weight.shape
    out_pad = ((out_dim + 127) // 128) * 128      # lane-dense output stores
    w_t = weight.T.astype(compute_dtype)          # (in_dim, out_dim)
    b2 = bias.astype(jnp.float32).reshape(1, out_dim)
    if out_pad != out_dim:
        w_t = jnp.pad(w_t, ((0, 0), (0, out_pad - out_dim)))
        b2 = jnp.pad(b2, ((0, 0), (0, out_pad - out_dim)))
    return w_t, b2, out_pad


# ---------------------------------------------------------------------------
# Wrapper
# ---------------------------------------------------------------------------
def linear_connector(x, weight, bias, k: int):
    """x: (B, S, in_dim); weight: (out_dim, in_dim); bias: (out_dim,).

    Returns (B, S // k, out_dim): AvgPool1d(k, k) over the sequence of Linear(x)."""
    B, S, in_dim = x.shape
    out_dim = weight.shape[0]
    # TODO(synk): PyTorch AvgPool1d silently drops a trailing remainder; here
    # we require S % k == 0 (pad/trim upstream if production sequences differ).
    assert S % k == 0, "need S % k == 0"
    S_out = S // k

    compute_dtype = x.dtype
    isz = jnp.dtype(compute_dtype).itemsize
    w_t, b2, out_pad = _prepare_params(weight, bias, compute_dtype)

    budget = _vmem_budget_bytes()

    # ---- K (in_dim) tiling: weight resident when it fits, else tiled slices.
    w_bytes = in_dim * out_pad * isz
    resident_limit = min(24 << 20, budget // 3)
    if w_bytes <= resident_limit or in_dim % 128 != 0:
        tK = in_dim
    else:
        blk_target = 4 << 20
        best, c = None, 128
        while c < in_dim:
            if in_dim % c == 0 and c * out_pad * isz <= blk_target:
                best = c
            c += 128
        tK = best if best is not None else in_dim
    nK = in_dim // tK
    n_w_buf = 1 if nK == 1 else 2   # constant-index weight -> single buffer

    # ---- Sequence tiling: largest tS that fits the per-TC VMEM budget,
    # including the in-kernel f32 temporaries (pooled LHS, dot result, acc).
    step = _sublanes(compute_dtype) * k           # keeps tS_out sublane-aligned
    fixed = (n_w_buf * tK * out_pad * isz         # weight buffer(s)
             + out_pad * 4                        # bias
             + (2 << 20))                         # slack
    per_row = (2 * tK * isz                       # x tile (double-buffered)
               + tK * isz                         # xb load
               + (2 * out_pad * isz               # out tile (double-buffered)
                  + out_pad * 4                   # f32 accumulator
                  + out_pad * 4                   # f32 dot result
                  + tK * 4 + tK * isz             # pooled f32 + cast
                  ) // k)
    tS = _pick_tile_s(S, k, per_row, step, budget - fixed)

    # Megacore (v7x has 2 TCs over the "parallel" axes): make sure there are
    # at least 2 parallel steps; shrink tS if a single whole-sequence tile
    # was picked for a single-batch input.
    while (B * (S // tS) < 2 and tS % 2 == 0 and tS // 2 >= k
           and (tS // 2) % k == 0 and S % (tS // 2) == 0):
        tS //= 2
    tS_out = tS // k

    grid = (B, S // tS, nK)
    est = fixed + tS * per_row
    vmem_limit = int(min(budget, max(est * 5 // 4 + (8 << 20), 32 << 20)))

    kernel = functools.partial(_connector_kernel, k=k, inv_k=1.0 / float(k))
    # Free row-major regroup of the k pooling windows (no data movement).
    x4 = x.reshape(B, S_out, k, in_dim)

    def build(use_pipeline_mode: bool):
        def spec(shape, imap, bufs=None):
            if bufs is None or not use_pipeline_mode:
                return pl.BlockSpec(shape, imap)
            return pl.BlockSpec(shape, imap, pipeline_mode=pl.Buffered(bufs))

        return pl.pallas_call(
            kernel,
            out_shape=jax.ShapeDtypeStruct((B, S_out, out_pad), x.dtype),
            grid_spec=pltpu.PrefetchScalarGridSpec(
                num_scalar_prefetch=0,
                grid=grid,
                in_specs=[
                    # x: one (sequence-tile, K-tile) block per step.
                    spec((1, tS_out, k, tK), lambda b, s, kk: (b, s, 0, kk)),
                    # weight: resident + single-buffered when nK == 1,
                    # otherwise a pipelined (double-buffered) K slice.
                    spec((tK, out_pad), lambda b, s, kk: (kk, 0),
                         bufs=1 if nK == 1 else None),
                    # bias: constant block, fetched once.
                    spec((1, out_pad), lambda b, s, kk: (0, 0), bufs=1),
                ],
                out_specs=pl.BlockSpec((1, tS_out, out_pad),
                                       lambda b, s, kk: (b, s, 0)),
                scratch_shapes=[pltpu.VMEM((tS_out, out_pad), jnp.float32)],
            ),
            compiler_params=pltpu.CompilerParams(
                dimension_semantics=("parallel", "parallel", "arbitrary"),
                vmem_limit_bytes=vmem_limit,
            ),
        )

    try:
        out_padded = build(True)(x4, w_t, b2)
    except Exception:
        # pl.Buffered / pipeline_mode unavailable or rejected on this jax
        # version: fall back to default double-buffering (same semantics).
        out_padded = build(False)(x4, w_t, b2)

    if out_pad != out_dim:
        # Keep the padded out_dim downstream when possible to avoid this pass.
        out_padded = out_padded[..., :out_dim]
    return out_padded


# ---------------------------------------------------------------------------
# Reference + self-test
# ---------------------------------------------------------------------------
def _reference(x, weight, bias, k):
    y = jnp.einsum("bsi,oi->bso", x, weight) + bias            # Linear
    B, S, D = y.shape
    return jnp.mean(y.reshape(B, S // k, k, D), axis=2)        # AvgPool1d(k, k)


if __name__ == "__main__":
    # Small shapes consistent with the module: batch=2, seq=8, in_dim=32,
    # out_dim=32, pool kernel k=2.
    B, S, in_dim, out_dim, k = 2, 8, 32, 32, 2

    key = jax.random.PRNGKey(0)
    kx, kw, kb = jax.random.split(key, 3)

    x = jax.random.normal(kx, (B, S, in_dim), dtype=jnp.float32)
    # Deterministic "nn.Linear"-style parameters (synthetic, not a checkpoint).
    bound = 1.0 / (in_dim ** 0.5)
    weight = jax.random.uniform(kw, (out_dim, in_dim), jnp.float32, -bound, bound)
    bias = jax.random.uniform(kb, (out_dim,), jnp.float32, -bound, bound)

    out = linear_connector(x, weight, bias, k)
    out = jax.block_until_ready(out)

    ref = _reference(x, weight, bias, k)
    assert out.shape == (B, S // k, out_dim)
    # Pool-before-matmul reorders FP summation vs GEMM-then-pool; the
    # difference is at rounding level, well inside this tolerance.
    assert jnp.allclose(out, ref, atol=1e-4, rtol=1e-4), float(
        jnp.max(jnp.abs(out - ref)))

    print("KERNEL_OK")
</pallas_src>

<mosaic_0001>
module attributes {stable_mosaic.version = 11 : i64} {
  func.func @_connector_kernel(%arg0: i32, %arg1: i32, %arg2: i32, %arg3: memref<1x4x2x32xf32, #tpu.memory_space<vmem>>, %arg4: memref<32x128xf32, #tpu.memory_space<vmem>>, %arg5: memref<1x128xf32, #tpu.memory_space<vmem>>, %arg6: memref<1x4x128xf32, #tpu.memory_space<vmem>>, %arg7: memref<4x128xf32, #tpu.memory_space<vmem>>) attributes {dimension_semantics = [#tpu.dimension_semantics<parallel>, #tpu.dimension_semantics<parallel>, #tpu.dimension_semantics<arbitrary>], iteration_bounds = array<i64: 2, 1, 1>, scalar_prefetch = 0 : i64, scratch_operands = 1 : i64, tpu.core_type = #tpu.core_type<tc>, window_params = [{transform_indices = @transform_0, window_bounds = array<i64: 1, 4, 2, 32>}, {pipeline_mode = #tpu.pipeline_mode<synchronous>, transform_indices = @transform_1, window_bounds = array<i64: 32, 128>}, {pipeline_mode = #tpu.pipeline_mode<synchronous>, transform_indices = @transform_2, window_bounds = array<i64: 1, 128>}, {transform_indices = @transform_3, window_bounds = array<i64: 1, 4, 128>}]} {
    %c0_i32 = arith.constant 0 : i32
    %0 = arith.cmpi eq, %arg2, %c0_i32 : i32
    %1 = arith.extui %0 : i1 to i32
    %c0_i32_0 = arith.constant 0 : i32
    %2 = arith.cmpi ne, %1, %c0_i32_0 : i32
    scf.if %2 {
      %cst_13 = arith.constant 0.000000e+00 : f32
      %20 = vector.broadcast %cst_13 : f32 to vector<4x128xf32>
      %c0_14 = arith.constant 0 : index
      %c0_15 = arith.constant 0 : index
      %21 = vector.load %arg7[%c0_14, %c0_15] : memref<4x128xf32, #tpu.memory_space<vmem>>, vector<4x128xf32>
      tpu.vector_store %arg7[%c0_14, %c0_15], %20 {strides = array<i32>} : memref<4x128xf32, #tpu.memory_space<vmem>>, vector<4x128xf32>,
    } else {
    }
    %c0 = arith.constant 0 : index
    %c0_1 = arith.constant 0 : index
    %c0_2 = arith.constant 0 : index
    %c0_3 = arith.constant 0 : index
    %3 = vector.load %arg3[%c0, %c0_1, %c0_2, %c0_3] : memref<1x4x2x32xf32, #tpu.memory_space<vmem>>, vector<1x4x2x32xf32>
    %4 = vector.shape_cast %3 : vector<1x4x2x32xf32> to vector<4x2x32xf32>
    %5 = vector.extract_strided_slice %4 {offsets = [0, 0, 0], sizes = [4, 1, 32], strides = [1, 1, 1]} : vector<4x2x32xf32> to vector<4x1x32xf32>
    %6 = vector.shape_cast %5 : vector<4x1x32xf32> to vector<4x32xf32>
    %7 = vector.extract_strided_slice %4 {offsets = [0, 1, 0], sizes = [4, 1, 32], strides = [1, 1, 1]} : vector<4x2x32xf32> to vector<4x1x32xf32>
    %8 = vector.shape_cast %7 : vector<4x1x32xf32> to vector<4x32xf32>
    %9 = arith.addf %6, %8 : vector<4x32xf32>
    %cst = arith.constant 5.000000e-01 : f32
    %10 = vector.broadcast %cst : f32 to vector<4x32xf32>
    %11 = arith.mulf %9, %10 : vector<4x32xf32>
    %c0_4 = arith.constant 0 : index
    %c0_5 = arith.constant 0 : index
    %12 = vector.load %arg7[%c0_4, %c0_5] : memref<4x128xf32, #tpu.memory_space<vmem>>, vector<4x128xf32>
    %c0_6 = arith.constant 0 : index
    %c0_7 = arith.constant 0 : index
    %13 = vector.load %arg4[%c0_6, %c0_7] : memref<32x128xf32, #tpu.memory_space<vmem>>, vector<32x128xf32>
    %cst_8 = arith.constant dense<0.000000e+00> : vector<4x128xf32>
    %14 = tpu.matmul %11, %13, %cst_8 {dimension_numbers = #tpu.dot_dimension_numbers<[1], [0], [0], [1], [0, 0, 1, 1], [], []>} : vector<4x32xf32>, vector<32x128xf32>, vector<4x128xf32> -> vector<4x128xf32>
    %15 = arith.addf %12, %14 : vector<4x128xf32>
    %c0_9 = arith.constant 0 : index
    %c0_10 = arith.constant 0 : index
    %16 = vector.load %arg7[%c0_9, %c0_10] : memref<4x128xf32, #tpu.memory_space<vmem>>, vector<4x128xf32>
    tpu.vector_store %arg7[%c0_9, %c0_10], %15 {strides = array<i32>} : memref<4x128xf32, #tpu.memory_space<vmem>>, vector<4x128xf32>,
    %c0_i32_11 = arith.constant 0 : i32
    %17 = arith.cmpi eq, %arg2, %c0_i32_11 : i32
    %18 = arith.extui %17 : i1 to i32
    %c0_i32_12 = arith.constant 0 : i32
    %19 = arith.cmpi ne, %18, %c0_i32_12 : i32
    scf.if %19 {
      %c0_13 = arith.constant 0 : index
      %c0_14 = arith.constant 0 : index
      %20 = vector.load %arg7[%c0_13, %c0_14] : memref<4x128xf32, #tpu.memory_space<vmem>>, vector<4x128xf32>
      %c0_15 = arith.constant 0 : index
      %c0_16 = arith.constant 0 : index
      %21 = vector.load %arg5[%c0_15, %c0_16] : memref<1x128xf32, #tpu.memory_space<vmem>>, vector<1x128xf32>
      %22 = vector.broadcast %21 : vector<1x128xf32> to vector<4x128xf32>
      %23 = arith.addf %20, %22 : vector<4x128xf32>
      %c0_17 = arith.constant 0 : index
      %c0_18 = arith.constant 0 : index
      %c0_19 = arith.constant 0 : index
      %24 = vector.load %arg6[%c0_17, %c0_18, %c0_19] : memref<1x4x128xf32, #tpu.memory_space<vmem>>, vector<1x4x128xf32>
      %25 = vector.shape_cast %24 : vector<1x4x128xf32> to vector<4x128xf32>
      %26 = vector.shape_cast %23 : vector<4x128xf32> to vector<1x4x128xf32>
      tpu.vector_store %arg6[%c0_17, %c0_18, %c0_19], %26 {strides = array<i32>} : memref<1x4x128xf32, #tpu.memory_space<vmem>>, vector<1x4x128xf32>,
    } else {
    }
    return
  }
  func.func @transform_0(%arg0: i32, %arg1: i32, %arg2: i32) -> (i32, i32, i32, i32) {
    %c0_i32 = arith.constant 0 : i32
    %c0_i32_0 = arith.constant 0 : i32
    return %arg0, %arg1, %c0_i32, %arg2 : i32, i32, i32, i32
  }
  func.func @transform_1(%arg0: i32, %arg1: i32, %arg2: i32) -> (i32, i32) {
    %c0_i32 = arith.constant 0 : i32
    %c0_i32_0 = arith.constant 0 : i32
    return %arg2, %c0_i32 : i32, i32
  }
  func.func @transform_2(%arg0: i32, %arg1: i32, %arg2: i32) -> (i32, i32) {
    %c0_i32 = arith.constant 0 : i32
    %c0_i32_0 = arith.constant 0 : i32
    %c0_i32_1 = arith.constant 0 : i32
    return %c0_i32, %c0_i32_0 : i32, i32
  }
  func.func @transform_3(%arg0: i32, %arg1: i32, %arg2: i32) -> (i32, i32, i32) {
    %c0_i32 = arith.constant 0 : i32
    %c0_i32_0 = arith.constant 0 : i32
    return %arg0, %arg1, %c0_i32 : i32, i32, i32
  }
}

module attributes {stable_mosaic.version = 11 : i64} {
  func.func @_connector_kernel(%arg0: i32, %arg1: i32, %arg2: i32, %arg3: memref<1x4x2x32xf32, #tpu.memory_space<vmem>>, %arg4: memref<32x128xf32, #tpu.memory_space<vmem>>, %arg5: memref<1x128xf32, #tpu.memory_space<vmem>>, %arg6: memref<1x4x128xf32, #tpu.memory_space<vmem>>, %arg7: memref<4x128xf32, #tpu.memory_space<vmem>>) attributes {dimension_semantics = [#tpu.dimension_semantics<parallel>, #tpu.dimension_semantics<parallel>, #tpu.dimension_semantics<arbitrary>], iteration_bounds = array<i64: 2, 1, 1>, scalar_prefetch = 0 : i64, scratch_operands = 1 : i64, tpu.core_type = #tpu.core_type<tc>, window_params = [{transform_indices = @transform_0, window_bounds = array<i64: 1, 4, 2, 32>}, {transform_indices = @transform_1, window_bounds = array<i64: 32, 128>}, {pipeline_mode = #tpu.pipeline_mode<synchronous>, transform_indices = @transform_2, window_bounds = array<i64: 1, 128>}, {transform_indices = @transform_3, window_bounds = array<i64: 1, 4, 128>}]} {
    %c0_i32 = arith.constant 0 : i32
    %0 = arith.cmpi eq, %arg2, %c0_i32 : i32
    %1 = arith.extui %0 : i1 to i32
    %c0_i32_0 = arith.constant 0 : i32
    %2 = arith.cmpi ne, %1, %c0_i32_0 : i32
    scf.if %2 {
      %cst_13 = arith.constant 0.000000e+00 : f32
      %20 = vector.broadcast %cst_13 : f32 to vector<4x128xf32>
      %c0_14 = arith.constant 0 : index
      %c0_15 = arith.constant 0 : index
      %21 = vector.load %arg7[%c0_14, %c0_15] : memref<4x128xf32, #tpu.memory_space<vmem>>, vector<4x128xf32>
      tpu.vector_store %arg7[%c0_14, %c0_15], %20 {strides = array<i32>} : memref<4x128xf32, #tpu.memory_space<vmem>>, vector<4x128xf32>,
    } else {
    }
    %c0 = arith.constant 0 : index
    %c0_1 = arith.constant 0 : index
    %c0_2 = arith.constant 0 : index
    %c0_3 = arith.constant 0 : index
    %3 = vector.load %arg3[%c0, %c0_1, %c0_2, %c0_3] : memref<1x4x2x32xf32, #tpu.memory_space<vmem>>, vector<1x4x2x32xf32>
    %4 = vector.shape_cast %3 : vector<1x4x2x32xf32> to vector<4x2x32xf32>
    %5 = vector.extract_strided_slice %4 {offsets = [0, 0, 0], sizes = [4, 1, 32], strides = [1, 1, 1]} : vector<4x2x32xf32> to vector<4x1x32xf32>
    %6 = vector.shape_cast %5 : vector<4x1x32xf32> to vector<4x32xf32>
    %7 = vector.extract_strided_slice %4 {offsets = [0, 1, 0], sizes = [4, 1, 32], strides = [1, 1, 1]} : vector<4x2x32xf32> to vector<4x1x32xf32>
    %8 = vector.shape_cast %7 : vector<4x1x32xf32> to vector<4x32xf32>
    %9 = arith.addf %6, %8 : vector<4x32xf32>
    %cst = arith.constant 5.000000e-01 : f32
    %10 = vector.broadcast %cst : f32 to vector<4x32xf32>
    %11 = arith.mulf %9, %10 : vector<4x32xf32>
    %c0_4 = arith.constant 0 : index
    %c0_5 = arith.constant 0 : index
    %12 = vector.load %arg7[%c0_4, %c0_5] : memref<4x128xf32, #tpu.memory_space<vmem>>, vector<4x128xf32>
    %c0_6 = arith.constant 0 : index
    %c0_7 = arith.constant 0 : index
    %13 = vector.load %arg4[%c0_6, %c0_7] : memref<32x128xf32, #tpu.memory_space<vmem>>, vector<32x128xf32>
    %cst_8 = arith.constant dense<0.000000e+00> : vector<4x128xf32>
    %14 = tpu.matmul %11, %13, %cst_8 {dimension_numbers = #tpu.dot_dimension_numbers<[1], [0], [0], [1], [0, 0, 1, 1], [], []>} : vector<4x32xf32>, vector<32x128xf32>, vector<4x128xf32> -> vector<4x128xf32>
    %15 = arith.addf %12, %14 : vector<4x128xf32>
    %c0_9 = arith.constant 0 : index
    %c0_10 = arith.constant 0 : index
    %16 = vector.load %arg7[%c0_9, %c0_10] : memref<4x128xf32, #tpu.memory_space<vmem>>, vector<4x128xf32>
    tpu.vector_store %arg7[%c0_9, %c0_10], %15 {strides = array<i32>} : memref<4x128xf32, #tpu.memory_space<vmem>>, vector<4x128xf32>,
    %c0_i32_11 = arith.constant 0 : i32
    %17 = arith.cmpi eq, %arg2, %c0_i32_11 : i32
    %18 = arith.extui %17 : i1 to i32
    %c0_i32_12 = arith.constant 0 : i32
    %19 = arith.cmpi ne, %18, %c0_i32_12 : i32
    scf.if %19 {
      %c0_13 = arith.constant 0 : index
      %c0_14 = arith.constant 0 : index
      %20 = vector.load %arg7[%c0_13, %c0_14] : memref<4x128xf32, #tpu.memory_space<vmem>>, vector<4x128xf32>
      %c0_15 = arith.constant 0 : index
      %c0_16 = arith.constant 0 : index
      %21 = vector.load %arg5[%c0_15, %c0_16] : memref<1x128xf32, #tpu.memory_space<vmem>>, vector<1x128xf32>
      %22 = vector.broadcast %21 : vector<1x128xf32> to vector<4x128xf32>
      %23 = arith.addf %20, %22 : vector<4x128xf32>
      %c0_17 = arith.constant 0 : index
      %c0_18 = arith.constant 0 : index
      %c0_19 = arith.constant 0 : index
      %24 = vector.load %arg6[%c0_17, %c0_18, %c0_19] : memref<1x4x128xf32, #tpu.memory_space<vmem>>, vector<1x4x128xf32>
      %25 = vector.shape_cast %24 : vector<1x4x128xf32> to vector<4x128xf32>
      %26 = vector.shape_cast %23 : vector<4x128xf32> to vector<1x4x128xf32>
      tpu.vector_store %arg6[%c0_17, %c0_18, %c0_19], %26 {strides = array<i32>} : memref<1x4x128xf32, #tpu.memory_space<vmem>>, vector<1x4x128xf32>,
    } else {
    }
    return
  }
  func.func @transform_0(%arg0: i32, %arg1: i32, %arg2: i32) -> (i32, i32, i32, i32) {
    %c0_i32 = arith.constant 0 : i32
    %c0_i32_0 = arith.constant 0 : i32
    return %arg0, %arg1, %c0_i32, %arg2 : i32, i32, i32, i32
  }
  func.func @transform_1(%arg0: i32, %arg1: i32, %arg2: i32) -> (i32, i32) {
    %c0_i32 = arith.constant 0 : i32
    %c0_i32_0 = arith.constant 0 : i32
    return %arg2, %c0_i32 : i32, i32
  }
  func.func @transform_2(%arg0: i32, %arg1: i32, %arg2: i32) -> (i32, i32) {
    %c0_i32 = arith.constant 0 : i32
    %c0_i32_0 = arith.constant 0 : i32
    %c0_i32_1 = arith.constant 0 : i32
    return %c0_i32, %c0_i32_0 : i32, i32
  }
  func.func @transform_3(%arg0: i32, %arg1: i32, %arg2: i32) -> (i32, i32, i32) {
    %c0_i32 = arith.constant 0 : i32
    %c0_i32_0 = arith.constant 0 : i32
    return %arg0, %arg1, %c0_i32 : i32, i32, i32
  }
}

</mosaic_0001>

<bundles_post_ra>
// kernel: tpu_custom_call.1
= control target key start
LH: loop header
LB: loop body
LE: loop exit
PB: predicated region body
PF: predicated region fallthrough
CT: control target
= control target key end

     0   :  { %8 = vsyncpa [#allocation4], 0  ;;  %s1008_s0 = inlined_call_operand.hbm [shape: f32[2,4,2,32], index: 0, kind: input, shape index: {}]   ;;  %s1009_s1 = inlined_call_operand.hbm [shape: f32[32,128], index: 1, kind: input, shape index: {}]   ;;  %s1010_s2 = inlined_call_operand.vmem [shape: f32[1,128], index: 2, kind: input, shape index: {}]   ;;  %s1011_s3 = inlined_call_operand.hbm [shape: f32[2,4,128], index: 3, kind: output, shape index: {}]  }
   0x1   :  { %10 = vsyncpa [#allocation4 + $0x1], 0 }
   0x2   :  { %11 = vsyncpa [#allocation7], 0 }
   0x3   :  { %12 = vsyncpa [#allocation5], 0 }
   0x4   :  { %14 = vsyncpa [#allocation5 + $0x1], 0  ;;  %s787_s12 = smov 0   ;;  %s789_s13 = smov 0  }
   0x5   :  { %s791_s14 = smov 0   ;;  %s793_s15 = smov 0  }
   0x6   :  { %s795_s16 = smov 0   ;;  %s797_s17 = smov 0  }
   0x7 LB: > { %s490_s18 = sadd.s32 4294967295, %s755_s17   ;;  %s491_s19 = sadd.s32 4294967294, %s755_s17   ;;  %s755_s17 = sphi %s797_s17, %s20_s17   ;;  %s751_s16 = sphi %s795_s16, %s1035_s16   ;;  %s747_s15 = sphi %s793_s15, %s1034_s15   ;;  %s743_s14 = sphi %s791_s14, %s1033_s14   ;;  %s739_s13 = sphi %s789_s13, %s1032_s13   ;;  %s735_s12 = sphi %s787_s12, %s1031_s12  }
   0x8   : > { %p63_p0 = scmp.ne.s32.totalorder %s739_s13, %s735_s12  ;;  %p821_p1 = scmp.eq.s32.totalorder %s490_s18, 0 }
   0x9   : > { %p825_p2 = scmp.eq.s32.totalorder %s490_s18, 1  ;;  %p142_p3 = scmp.eq.s32.totalorder %s491_s19, 1 }
   0xa   : > { %s1016_s20 = scalar_select %p821_p1, 1, 0 }
   0xb   : > { %s1017_s21 = scalar_select %p825_p2, 1, 0 }
   0xc   : > { %p831_p4 = por %p821_p1, %p63_p0  ;;  %p492_p5 = scmp.ge.s32.totalorder %s755_s17, 1 }
   0xd   : > { %p836_p6 = por %p142_p3, %p63_p0  ;;  %p149_p7 = scmp.lt.s32.totalorder %s755_s17, 3 }
   0xe   : > { %s1018_s22 = scalar_select %p831_p4, 1, 0 }
   0xf   : > { %s1019_s23 = scalar_select %p836_p6, 1, 0 }
  0x10   : > { %p841_p8 = pnand %p492_p5, %p149_p7  ;;  %s757_s25 = smov [#allocation6]  }
  0x11   : > { %s164_s26 = sshll.u32 %s757_s25, 4  ;;  %s39_s28 = sadd.s32 1, %s751_s16  ;;  %s165_s26 = int_to_ptr.vmem [resolvable:$true] %s164_s26 }
  0x12   : > { %s1020_s24 = scalar_select %p841_p8, 1, 0 }
  0x13   : > { %p539_p9 = pneg %p841_p8  ;;  %s611_s4 = scalar_lea.hbm %s1009_s1, 512 }
  0x14   : > { %p612_p12 = scmp.ne.s32.totalorder %s1009_s1, %s611_s4  ;;  %p618_p5 = scmp.lt.u32.totalorder %s611_s4, %s1009_s1 }
  0x15   : > { %p850_p11 = pnand %p539_p9, %p821_p1 }
  0x17   : > { %p613_p13 = pneg %p850_p11 }
  0x19   : > { %p614_p0 = pnand %p613_p13, %p612_p12 }
  0x1b   : > { %p615_p3 = pneg %p614_p0 }
  0x1d   : > { %p620_p7 = pnand %p618_p5, %p615_p3 }
  0x1f   : > { %623 = shalt.err (!%p620_p7)
}
  0x20   : > { %s624_s9 = scalar_lea.vmem %s165_s26, 512  ;;  %p632_p1 = scmp.lt.s32.totalorder %s165_s26, %s165_s26 }
  0x21   : > { %p625_p9 = scmp.ne.s32.totalorder %s165_s26, %s624_s9  ;;  %p633_p4 = scmp.lt.s32.totalorder %s624_s9, %s624_s9 }
  0x23   : > { %p627_p10 = pnand %p625_p9, %p613_p13  ;;  %p634_p8 = por %p633_p4, %p632_p1 }
  0x25   : > { %p628_p6 = pneg %p627_p10 }
  0x27   : > { %p635_p2 = pnand %p634_p8, %p628_p6 }
  0x29   : > { %638 = shalt.err (!%p635_p2)
}
  0x2a   : > { %s758_s10 = smov 128   ;;  %s759_s11 = smov 8  }
  0x2b   : > { %542 = dma.hbm_to_vmem [thread:$0]  (!%p850_p11), %s1009_s1, 512, %s165_s26, [#allocation7], %s758_s10, %s758_s10, %s759_s11  }
  0x2c   : > { %p41_p1 = scmp.ge.s32.totalorder %s39_s28, 2  ;;  %s50_s25 = sadd.s32 1, %s743_s14 }
  0x2d   : > { %p57_p2 = scmp.ne.s32.totalorder %s743_s14, %s739_s13  ;;  %p58_p4 = scmp.eq.s32.totalorder %s755_s17, 0 }
  0x2e   : > { %s1037_s28 = smov (%p41_p1, %s39_s28), 0  ;;  %p1023_p8 = scmp.ne.s32.totalorder %s1017_s21, 0 }
  0x2f   : > { %p877_p6 = por %p58_p4, %p57_p2  ;;  %s43_s27 = ssub.s32 %s751_s16, %s1037_s28 }
  0x30   : > { %p883_p10 = por %p1023_p8, %p57_p2  ;;  %p552_p12 = scmp.lt.s32.totalorder %s755_s17, 2 }
  0x31   : > { %p48_p11 = scmp.eq.s32.totalorder %s43_s27, 0  ;;  %s181_s26 = sand.u32 1, %s743_s14  }
  0x32   : > { %s495_s4 = sshll.u32 %s181_s26, 3  ;;  %s508_s6 = sshll.u32 %s751_s16, 7 }
  0x33   : > { %s892_s5 = scalar_select %p48_p11, %s743_s14, %s50_s25  }
  0x34   : > { %s898_s9 = scalar_lea.hbm %s1008_s0, %s508_s6  ;;  %s185_s21 = scalar_lea.vmem [#allocation3], %s495_s4 }
  0x35   : > { %s195_s10 = sshll.u32 %s185_s21, 4  ;;  %p904_p13 = pnand %p552_p12, %p877_p6  ;;  %s900_s10 = int_to_ptr.vmem [resolvable:$true] %s195_s10 }
  0x36   : > { %s908_s18 = scalar_lea.sflag [#allocation4], %s181_s26  ;;  %s639_s19 = scalar_lea.hbm %s898_s9, 128 }
  0x37   : > { %p640_p0 = scmp.ne.s32.totalorder %s898_s9, %s639_s19  ;;  %p641_p3 = pneg %p904_p13 }
  0x38   : > { %s644_s29 = scalar_lea.hbm %s1008_s0, 256  ;;  %p645_p9 = scmp.lt.u32.totalorder %s898_s9, %s1008_s0 }
  0x39   : > { %p642_p5 = pnand %p641_p3, %p640_p0  ;;  %p646_p1 = scmp.lt.u32.totalorder %s644_s29, %s639_s19 }
  0x3a   : > { %p648_p4 = scmp.lt.u32.totalorder %s639_s19, %s898_s9 }
  0x3b   : > { %p643_p7 = pneg %p642_p5  ;;  %p647_p2 = por %p646_p1, %p645_p9 }
  0x3d   : > { %p649_p6 = por %p648_p4, %p647_p2 }
  0x3f   : > { %p650_p8 = pnand %p649_p6, %p643_p7 }
  0x41   : > { %653 = shalt.err (!%p650_p8)
}
  0x42   : > { %s654_s26 = scalar_lea.vmem %s900_s10, 128  ;;  %s760_s7 = smov [#allocation3]  }
  0x43   : > { %p655_p12 = scmp.ne.s32.totalorder %s900_s10, %s654_s26  ;;  %s659_s8 = sshll.u32 %s760_s7, 4  ;;  %s660_s8 = int_to_ptr.vmem [resolvable:$false] %s659_s8 }
  0x44   : > { %s661_s21 = scalar_lea.vmem %s660_s8, 256  ;;  %p662_p5 = scmp.lt.s32.totalorder %s900_s10, %s660_s8 }
  0x45   : > { %p657_p11 = pnand %p655_p12, %p641_p3  ;;  %p663_p9 = scmp.lt.s32.totalorder %s661_s21, %s654_s26 }
  0x47   : > { %p658_p0 = pneg %p657_p11  ;;  %p664_p1 = por %p663_p9, %p662_p5 }
  0x49   : > { %p665_p2 = pnand %p664_p1, %p658_p0 }
  0x4b   : > { %668 = shalt.err (!%p665_p2)
}
  0x4c   : > { %s761_s19 = smov 32   ;;  %s762_s25 = smov 2  }
  0x4d   : > { %546 = dma.hbm_to_vmem [thread:$0]  (!%p904_p13), %s898_s9, 128, %s900_s10, %s908_s18, %s761_s19, %s761_s19, %s762_s25  }
  0x4e   : > { %p1026_p3 = scmp.ne.s32.totalorder %s1020_s24, 0 }
  0x4f   : > { %s939_s27 = sand.u32 (!%p1026_p3), 1, %s739_s13   ;;  %p1027_p7 = scmp.ne.s32.totalorder (!%p1026_p3), %s1018_s22, 0 }
  0x50   : > { %207 = sbr.rel (%p1026_p3) target bundleno = 343 (0x157), region = 32  ;;  %s499_s29 = sshll.u32 (!%p1026_p3), %s939_s27, 3 }
  0x51   : > { %s210_s4 = scalar_lea.sflag (!%p1026_p3), [#allocation4], %s939_s27  ;;  %s213_s6 = scalar_lea.vmem (!%p1026_p3), [#allocation3], %s499_s29 }
  0x57   : > { %722 = dma.done.wait (%p1027_p7), %s210_s4, 128  }
  0x58   : > { %724 = vsyncadd (%p1027_p7), %s210_s4, 4294967168  ;;  %p1028_p4 = scmp.ne.s32.totalorder %s1016_s20, 0 }
  0x5a   : > { %726 = dma.done.wait (%p1028_p4), [#allocation7], 512  }
  0x5b   : > { %728 = vsyncadd (%p1028_p4), [#allocation7], 4294966784  ;;  %v763_v0 = vmov 0.0|0.0   ;;  %v764_v1 = vmov 0.0   ;;  %vm765_vm0 = vmmov 0   ;;  %v272_v2 = vld [vmem:[#allocation6] sm:$0xff] }
  0x5c   : > { %525 = vmatprep.subr.bf16.mxu0 %v763_v0  ;;  %246 = vst [vmem:[#allocation2] sm:$0xf] %v764_v1  ;;  %522 = vmatprep.mubr.msk.f32.mxu0 %vm765_vm0, %v764_v1  ;;  %v273_v3 = vld [vmem:[#allocation6 + $0x8] sm:$0xff]  ;;  %v274_v4 = vld [vmem:[#allocation6 + $0x10] sm:$0xff]  ;;  %v275_v6 = vld [vmem:[#allocation6 + $0x18] sm:$0xff]  ;;  %vm281_vm1 = vcmask 1041409  }
  0x5d   : > { %v526_v5 = vpack.c.bf16 %v273_v3, %v272_v2  ;;  %v247_v7 = vld [vmem:[%s213_s6] sm:$0x3]  ;;  %v248_v8 = vld [vmem:[%s213_s6 + $0x2] sm:$0x3]  ;;  %v249_v9 = vld [vmem:[%s213_s6 + $0x4] sm:$0x3]  ;;  %v529_v13 = vpack.c.bf16 %v275_v6, %v274_v4 }
  0x5e   : > { %v250_v10 = vld [vmem:[%s213_s6 + $0x6] sm:$0x3]  ;;  %v255_v11 = vrot.slane %v247_v7, 1  ;;  %v256_v12 = vrot.slane %v248_v8, 1  ;;  %v257_v14 = vrot.slane %v249_v9, 1  ;;  %vm284_vm2 = vcmask 1042434  }
  0x5f   : > { %527 = vmatpush3.bf16.msra.mxu0 %v526_v5  ;;  %v258_v15 = vrot.slane %v250_v10, 1  ;;  %vm287_vm3 = vcmask 1043459   ;;  %vm289_vm4 = vcmask 261120   ;;  %s501_s20 = sshll.u32 %s939_s27, 2  ;;  %v503_v34 = vld [vmem:[%s1010_s2] ss:$0 sm:$0xff] }
  0x60   : > { %528 = vmatprep.subr.bf16.mxu0 %v763_v0  ;;  %v263_v16 = vadd.f32 %v255_v11, %v247_v7  ;;  %v264_v17 = vadd.f32 %v256_v12, %v248_v8  ;;  %v265_v18 = vadd.f32 %v257_v14, %v249_v9  ;;  %s505_s9 = sshll.u32 %s747_s15, 6  ;;  %s239_s10 = scalar_lea.vmem [#allocation8], %s501_s20 }
  0x61   : > { %v266_v19 = vadd.f32 %v258_v15, %v250_v10  ;;  %s392_s11 = sshll.u32 %s239_s10, 4  ;;  %s959_s7 = scalar_lea.hbm %s1011_s3, %s505_s9  ;;  %s961_s11 = int_to_ptr.vmem [resolvable:$true] %s392_s11 }
  0x62   : > { %v267_v20 = vmul.f32 0.5, %v263_v16  ;;  %v268_v21 = vmul.f32 0.5, %v264_v17  ;;  %v269_v22 = vmul.f32 0.5, %v265_v18  ;;  %s378_s8 = scalar_lea.sflag [#allocation5], %s939_s27  ;;  %s669_s21 = scalar_lea.vmem %s961_s11, 64 }
  0x63   : > { %530 = vmatpush3.bf16.msra.mxu0 %v529_v13  ;;  %v270_v23 = vmul.f32 0.5, %v266_v19  ;;  %v271_v30 = vld [vmem:[#allocation2] sm:$0xf]  ;;  %p670_p13 = scmp.ne.s32.totalorder %s961_s11, %s669_s21  ;;  %s766_s15 = smov [#allocation8]  }
  0x64   : > { %v280_v24 = vrot.slane %v268_v21, 7  ;;  %v283_v25 = vrot.slane %v269_v22, 6  ;;  %s673_s19 = sshll.u32 %s766_s15, 4  ;;  %s674_s19 = int_to_ptr.vmem [resolvable:$false] %s673_s19 }
  0x65   : > { %v286_v26 = vrot.slane %v270_v23, 5  ;;  %p671_p6 = pnand %p670_p13, %p883_p10  ;;  %s675_s25 = scalar_lea.vmem %s674_s19, 128 }
  0x66   : > { %v282_v27 = vsel %vm281_vm1, %v280_v24, %v267_v20  ;;  %p676_p12 = scmp.lt.s32.totalorder %s961_s11, %s674_s19  ;;  %p677_p11 = scmp.lt.s32.totalorder %s675_s25, %s669_s21 }
  0x67   : > { %v285_v28 = vsel %vm284_vm2, %v283_v25, %v282_v27  ;;  %p672_p8 = pneg %p671_p6 }
  0x68   : > { %v288_v29 = vsel %vm287_vm3, %v286_v26, %v285_v28  ;;  %p678_p0 = por %p677_p11, %p676_p12 }
  0x69   : > { %523 = vmatmul.mubr.msk.f32.vlgmr.msra.gmra.mrb[0].mxu0 %vm289_vm4, %v288_v29 }
  0x6a   : > { %p679_p5 = pnand %p678_p0, %p672_p8 }
 0x13c   : > { %v358_v31 = vpop.f32.mrb[0].mxu0 }
 0x13d   : > { %v362_v32 = vadd.f32 %v358_v31, %v271_v30  ;;  %v524_v33 = vpop.f32.mrb[1].mxu0 }
 0x13f   : > { %363 = vst [vmem:[#allocation2] sm:$0xf] %v362_v32 }
 0x146   : > { %v367_v35 = vld [vmem:[#allocation2] sm:$0xf] }
 0x147   : > { %v375_v36 = vadd.f32 %v503_v34, %v367_v35 }
 0x149   : > { %376 = vst [vmem:[%s239_s10] sm:$0xf] %v375_v36 }
 0x14a   : > { %682 = shalt.err (!%p679_p5)
}
 0x14b   : > { %s683_s27 = scalar_lea.hbm %s959_s7, 64  ;;  %s687_s6 = scalar_lea.hbm %s1011_s3, 128 }
 0x14c   : > { %p684_p9 = scmp.ne.s32.totalorder %s959_s7, %s683_s27  ;;  %p688_p3 = scmp.lt.u32.totalorder %s959_s7, %s1011_s3 }
 0x14d   : > { %p689_p7 = scmp.lt.u32.totalorder %s687_s6, %s683_s27  ;;  %p691_p13 = scmp.lt.u32.totalorder %s683_s27, %s959_s7 }
 0x14e   : > { %p685_p1 = pnand %p684_p9, %p883_p10 }
 0x14f   : > { %p690_p4 = por %p689_p7, %p688_p3 }
 0x150   : > { %p686_p2 = pneg %p685_p1 }
 0x151   : > { %p692_p6 = por %p691_p13, %p690_p4 }
 0x153   : > { %p693_p8 = pnand %p692_p6, %p686_p2 }
 0x155   : > { %696 = shalt.err (!%p693_p8)
}
 0x156   : > { %537 = dma.vmem_to_hbm [thread:$0]  (%p883_p10), %s961_s11, 64, %s959_s7, %s378_s8  }
 0x157 PF: > { %s404_s24 = sand.u32 1, %s735_s12   ;;  %p1029_p12 = scmp.ne.s32.totalorder %s1019_s23, 0 }
 0x158   : > { %p1030_p11 = scmp.ge.s32.totalorder %s755_s17, 2  ;;  %s405_s9 = scalar_lea.sflag [#allocation5], %s404_s24 }
 0x15a   : > { %p548_p0 = pnand %p1030_p11, %p1029_p12 }
 0x15c   : > { %730 = dma.done.wait (!%p548_p0), %s405_s9, 64  }
 0x15d   : > { %732 = vsyncadd (!%p548_p0), %s405_s9, 4294967232  ;;  %s20_s17 = sadd.s32 1, %s755_s17   ;;  %s1031_s12 = smov %s739_s13 }
 0x15e   : > { %p17_p5 = scmp.ge.s32.totalorder %s20_s17, 4   ;;  %s1032_s13 = smov %s743_s14 }
 0x15f   : > { %s1033_s14 = smov %s892_s5  ;;  %s1034_s15 = smov %s751_s16 }
 0x160   : > { %s1035_s16 = smov %s1037_s28  ;;  %19 = sbr.rel (!%p17_p5) target bundleno = 7 (0x7), region = 90 }
 0x167   :  { %410 = vsyncpa [#allocation4], 1 }
 0x168   :  { %412 = vsyncpa [#allocation4 + $0x1], 1 }
 0x169   :  { %413 = vsyncpa [#allocation7], 1 }
 0x16a   :  { %414 = vsyncpa [#allocation5], 1 }
 0x16b   :  { %416 = vsyncpa [#allocation5 + $0x1], 1 }

// kernel: tpu_custom_call.1
= control target key start
LH: loop header
LB: loop body
LE: loop exit
PB: predicated region body
PF: predicated region fallthrough
CT: control target
= control target key end

     0   :  { %8 = vsyncpa [#allocation4], 0  ;;  %s1008_s0 = inlined_call_operand.hbm [shape: f32[2,4,2,32], index: 0, kind: input, shape index: {}]   ;;  %s1009_s1 = inlined_call_operand.hbm [shape: f32[32,128], index: 1, kind: input, shape index: {}]   ;;  %s1010_s2 = inlined_call_operand.vmem [shape: f32[1,128], index: 2, kind: input, shape index: {}]   ;;  %s1011_s3 = inlined_call_operand.hbm [shape: f32[2,4,128], index: 3, kind: output, shape index: {}]  }
   0x1   :  { %10 = vsyncpa [#allocation4 + $0x1], 0 }
   0x2   :  { %11 = vsyncpa [#allocation7], 0 }
   0x3   :  { %12 = vsyncpa [#allocation5], 0 }
   0x4   :  { %14 = vsyncpa [#allocation5 + $0x1], 0  ;;  %s787_s12 = smov 0   ;;  %s789_s13 = smov 0  }
   0x5   :  { %s791_s14 = smov 0   ;;  %s793_s15 = smov 0  }
   0x6   :  { %s795_s16 = smov 0   ;;  %s797_s17 = smov 0  }
   0x7 LB: > { %s490_s18 = sadd.s32 4294967295, %s755_s17   ;;  %s491_s19 = sadd.s32 4294967294, %s755_s17   ;;  %s755_s17 = sphi %s797_s17, %s20_s17   ;;  %s751_s16 = sphi %s795_s16, %s1035_s16   ;;  %s747_s15 = sphi %s793_s15, %s1034_s15   ;;  %s743_s14 = sphi %s791_s14, %s1033_s14   ;;  %s739_s13 = sphi %s789_s13, %s1032_s13   ;;  %s735_s12 = sphi %s787_s12, %s1031_s12  }
   0x8   : > { %p63_p0 = scmp.ne.s32.totalorder %s739_s13, %s735_s12  ;;  %p821_p1 = scmp.eq.s32.totalorder %s490_s18, 0 }
   0x9   : > { %p825_p2 = scmp.eq.s32.totalorder %s490_s18, 1  ;;  %p142_p3 = scmp.eq.s32.totalorder %s491_s19, 1 }
   0xa   : > { %s1016_s20 = scalar_select %p821_p1, 1, 0 }
   0xb   : > { %s1017_s21 = scalar_select %p825_p2, 1, 0 }
   0xc   : > { %p831_p4 = por %p821_p1, %p63_p0  ;;  %p492_p5 = scmp.ge.s32.totalorder %s755_s17, 1 }
   0xd   : > { %p836_p6 = por %p142_p3, %p63_p0  ;;  %p149_p7 = scmp.lt.s32.totalorder %s755_s17, 3 }
   0xe   : > { %s1018_s22 = scalar_select %p831_p4, 1, 0 }
   0xf   : > { %s1019_s23 = scalar_select %p836_p6, 1, 0 }
  0x10   : > { %p841_p8 = pnand %p492_p5, %p149_p7  ;;  %s757_s25 = smov [#allocation6]  }
  0x11   : > { %s164_s26 = sshll.u32 %s757_s25, 4  ;;  %s39_s28 = sadd.s32 1, %s751_s16  ;;  %s165_s26 = int_to_ptr.vmem [resolvable:$true] %s164_s26 }
  0x12   : > { %s1020_s24 = scalar_select %p841_p8, 1, 0 }
  0x13   : > { %p539_p9 = pneg %p841_p8  ;;  %s611_s4 = scalar_lea.hbm %s1009_s1, 512 }
  0x14   : > { %p612_p12 = scmp.ne.s32.totalorder %s1009_s1, %s611_s4  ;;  %p618_p5 = scmp.lt.u32.totalorder %s611_s4, %s1009_s1 }
  0x15   : > { %p850_p11 = pnand %p539_p9, %p821_p1 }
  0x17   : > { %p613_p13 = pneg %p850_p11 }
  0x19   : > { %p614_p0 = pnand %p613_p13, %p612_p12 }
  0x1b   : > { %p615_p3 = pneg %p614_p0 }
  0x1d   : > { %p620_p7 = pnand %p618_p5, %p615_p3 }
  0x1f   : > { %623 = shalt.err (!%p620_p7)
}
  0x20   : > { %s624_s9 = scalar_lea.vmem %s165_s26, 512  ;;  %p632_p1 = scmp.lt.s32.totalorder %s165_s26, %s165_s26 }
  0x21   : > { %p625_p9 = scmp.ne.s32.totalorder %s165_s26, %s624_s9  ;;  %p633_p4 = scmp.lt.s32.totalorder %s624_s9, %s624_s9 }
  0x23   : > { %p627_p10 = pnand %p625_p9, %p613_p13  ;;  %p634_p8 = por %p633_p4, %p632_p1 }
  0x25   : > { %p628_p6 = pneg %p627_p10 }
  0x27   : > { %p635_p2 = pnand %p634_p8, %p628_p6 }
  0x29   : > { %638 = shalt.err (!%p635_p2)
}
  0x2a   : > { %s758_s10 = smov 128   ;;  %s759_s11 = smov 8  }
  0x2b   : > { %542 = dma.hbm_to_vmem [thread:$0]  (!%p850_p11), %s1009_s1, 512, %s165_s26, [#allocation7], %s758_s10, %s758_s10, %s759_s11  }
  0x2c   : > { %p41_p1 = scmp.ge.s32.totalorder %s39_s28, 2  ;;  %s50_s25 = sadd.s32 1, %s743_s14 }
  0x2d   : > { %p57_p2 = scmp.ne.s32.totalorder %s743_s14, %s739_s13  ;;  %p58_p4 = scmp.eq.s32.totalorder %s755_s17, 0 }
  0x2e   : > { %s1037_s28 = smov (%p41_p1, %s39_s28), 0  ;;  %p1023_p8 = scmp.ne.s32.totalorder %s1017_s21, 0 }
  0x2f   : > { %p877_p6 = por %p58_p4, %p57_p2  ;;  %s43_s27 = ssub.s32 %s751_s16, %s1037_s28 }
  0x30   : > { %p883_p10 = por %p1023_p8, %p57_p2  ;;  %p552_p12 = scmp.lt.s32.totalorder %s755_s17, 2 }
  0x31   : > { %p48_p11 = scmp.eq.s32.totalorder %s43_s27, 0  ;;  %s181_s26 = sand.u32 1, %s743_s14  }
  0x32   : > { %s495_s4 = sshll.u32 %s181_s26, 3  ;;  %s508_s6 = sshll.u32 %s751_s16, 7 }
  0x33   : > { %s892_s5 = scalar_select %p48_p11, %s743_s14, %s50_s25  }
  0x34   : > { %s898_s9 = scalar_lea.hbm %s1008_s0, %s508_s6  ;;  %s185_s21 = scalar_lea.vmem [#allocation3], %s495_s4 }
  0x35   : > { %s195_s10 = sshll.u32 %s185_s21, 4  ;;  %p904_p13 = pnand %p552_p12, %p877_p6  ;;  %s900_s10 = int_to_ptr.vmem [resolvable:$true] %s195_s10 }
  0x36   : > { %s908_s18 = scalar_lea.sflag [#allocation4], %s181_s26  ;;  %s639_s19 = scalar_lea.hbm %s898_s9, 128 }
  0x37   : > { %p640_p0 = scmp.ne.s32.totalorder %s898_s9, %s639_s19  ;;  %p641_p3 = pneg %p904_p13 }
  0x38   : > { %s644_s29 = scalar_lea.hbm %s1008_s0, 256  ;;  %p645_p9 = scmp.lt.u32.totalorder %s898_s9, %s1008_s0 }
  0x39   : > { %p642_p5 = pnand %p641_p3, %p640_p0  ;;  %p646_p1 = scmp.lt.u32.totalorder %s644_s29, %s639_s19 }
  0x3a   : > { %p648_p4 = scmp.lt.u32.totalorder %s639_s19, %s898_s9 }
  0x3b   : > { %p643_p7 = pneg %p642_p5  ;;  %p647_p2 = por %p646_p1, %p645_p9 }
  0x3d   : > { %p649_p6 = por %p648_p4, %p647_p2 }
  0x3f   : > { %p650_p8 = pnand %p649_p6, %p643_p7 }
  0x41   : > { %653 = shalt.err (!%p650_p8)
}
  0x42   : > { %s654_s26 = scalar_lea.vmem %s900_s10, 128  ;;  %s760_s7 = smov [#allocation3]  }
  0x43   : > { %p655_p12 = scmp.ne.s32.totalorder %s900_s10, %s654_s26  ;;  %s659_s8 = sshll.u32 %s760_s7, 4  ;;  %s660_s8 = int_to_ptr.vmem [resolvable:$false] %s659_s8 }
  0x44   : > { %s661_s21 = scalar_lea.vmem %s660_s8, 256  ;;  %p662_p5 = scmp.lt.s32.totalorder %s900_s10, %s660_s8 }
  0x45   : > { %p657_p11 = pnand %p655_p12, %p641_p3  ;;  %p663_p9 = scmp.lt.s32.totalorder %s661_s21, %s654_s26 }
  0x47   : > { %p658_p0 = pneg %p657_p11  ;;  %p664_p1 = por %p663_p9, %p662_p5 }
  0x49   : > { %p665_p2 = pnand %p664_p1, %p658_p0 }
  0x4b   : > { %668 = shalt.err (!%p665_p2)
}
  0x4c   : > { %s761_s19 = smov 32   ;;  %s762_s25 = smov 2  }
  0x4d   : > { %546 = dma.hbm_to_vmem [thread:$0]  (!%p904_p13), %s898_s9, 128, %s900_s10, %s908_s18, %s761_s19, %s761_s19, %s762_s25  }
  0x4e   : > { %p1026_p3 = scmp.ne.s32.totalorder %s1020_s24, 0 }
  0x4f   : > { %s939_s27 = sand.u32 (!%p1026_p3), 1, %s739_s13   ;;  %p1027_p7 = scmp.ne.s32.totalorder (!%p1026_p3), %s1018_s22, 0 }
  0x50   : > { %207 = sbr.rel (%p1026_p3) target bundleno = 343 (0x157), region = 32  ;;  %s499_s29 = sshll.u32 (!%p1026_p3), %s939_s27, 3 }
  0x51   : > { %s210_s4 = scalar_lea.sflag (!%p1026_p3), [#allocation4], %s939_s27  ;;  %s213_s6 = scalar_lea.vmem (!%p1026_p3), [#allocation3], %s499_s29 }
  0x57   : > { %722 = dma.done.wait (%p1027_p7), %s210_s4, 128  }
  0x58   : > { %724 = vsyncadd (%p1027_p7), %s210_s4, 4294967168  ;;  %p1028_p4 = scmp.ne.s32.totalorder %s1016_s20, 0 }
  0x5a   : > { %726 = dma.done.wait (%p1028_p4), [#allocation7], 512  }
  0x5b   : > { %728 = vsyncadd (%p1028_p4), [#allocation7], 4294966784  ;;  %v763_v0 = vmov 0.0|0.0   ;;  %v764_v1 = vmov 0.0   ;;  %vm765_vm0 = vmmov 0   ;;  %v272_v2 = vld [vmem:[#allocation6] sm:$0xff] }
  0x5c   : > { %525 = vmatprep.subr.bf16.mxu0 %v763_v0  ;;  %246 = vst [vmem:[#allocation2] sm:$0xf] %v764_v1  ;;  %522 = vmatprep.mubr.msk.f32.mxu0 %vm765_vm0, %v764_v1  ;;  %v273_v3 = vld [vmem:[#allocation6 + $0x8] sm:$0xff]  ;;  %v274_v4 = vld [vmem:[#allocation6 + $0x10] sm:$0xff]  ;;  %v275_v6 = vld [vmem:[#allocation6 + $0x18] sm:$0xff]  ;;  %vm281_vm1 = vcmask 1041409  }
  0x5d   : > { %v526_v5 = vpack.c.bf16 %v273_v3, %v272_v2  ;;  %v247_v7 = vld [vmem:[%s213_s6] sm:$0x3]  ;;  %v248_v8 = vld [vmem:[%s213_s6 + $0x2] sm:$0x3]  ;;  %v249_v9 = vld [vmem:[%s213_s6 + $0x4] sm:$0x3]  ;;  %v529_v13 = vpack.c.bf16 %v275_v6, %v274_v4 }
  0x5e   : > { %v250_v10 = vld [vmem:[%s213_s6 + $0x6] sm:$0x3]  ;;  %v255_v11 = vrot.slane %v247_v7, 1  ;;  %v256_v12 = vrot.slane %v248_v8, 1  ;;  %v257_v14 = vrot.slane %v249_v9, 1  ;;  %vm284_vm2 = vcmask 1042434  }
  0x5f   : > { %527 = vmatpush3.bf16.msra.mxu0 %v526_v5  ;;  %v258_v15 = vrot.slane %v250_v10, 1  ;;  %vm287_vm3 = vcmask 1043459   ;;  %vm289_vm4 = vcmask 261120   ;;  %s501_s20 = sshll.u32 %s939_s27, 2  ;;  %v503_v34 = vld [vmem:[%s1010_s2] ss:$0 sm:$0xff] }
  0x60   : > { %528 = vmatprep.subr.bf16.mxu0 %v763_v0  ;;  %v263_v16 = vadd.f32 %v255_v11, %v247_v7  ;;  %v264_v17 = vadd.f32 %v256_v12, %v248_v8  ;;  %v265_v18 = vadd.f32 %v257_v14, %v249_v9  ;;  %s505_s9 = sshll.u32 %s747_s15, 6  ;;  %s239_s10 = scalar_lea.vmem [#allocation8], %s501_s20 }
  0x61   : > { %v266_v19 = vadd.f32 %v258_v15, %v250_v10  ;;  %s392_s11 = sshll.u32 %s239_s10, 4  ;;  %s959_s7 = scalar_lea.hbm %s1011_s3, %s505_s9  ;;  %s961_s11 = int_to_ptr.vmem [resolvable:$true] %s392_s11 }
  0x62   : > { %v267_v20 = vmul.f32 0.5, %v263_v16  ;;  %v268_v21 = vmul.f32 0.5, %v264_v17  ;;  %v269_v22 = vmul.f32 0.5, %v265_v18  ;;  %s378_s8 = scalar_lea.sflag [#allocation5], %s939_s27  ;;  %s669_s21 = scalar_lea.vmem %s961_s11, 64 }
  0x63   : > { %530 = vmatpush3.bf16.msra.mxu0 %v529_v13  ;;  %v270_v23 = vmul.f32 0.5, %v266_v19  ;;  %v271_v30 = vld [vmem:[#allocation2] sm:$0xf]  ;;  %p670_p13 = scmp.ne.s32.totalorder %s961_s11, %s669_s21  ;;  %s766_s15 = smov [#allocation8]  }
  0x64   : > { %v280_v24 = vrot.slane %v268_v21, 7  ;;  %v283_v25 = vrot.slane %v269_v22, 6  ;;  %s673_s19 = sshll.u32 %s766_s15, 4  ;;  %s674_s19 = int_to_ptr.vmem [resolvable:$false] %s673_s19 }
  0x65   : > { %v286_v26 = vrot.slane %v270_v23, 5  ;;  %p671_p6 = pnand %p670_p13, %p883_p10  ;;  %s675_s25 = scalar_lea.vmem %s674_s19, 128 }
  0x66   : > { %v282_v27 = vsel %vm281_vm1, %v280_v24, %v267_v20  ;;  %p676_p12 = scmp.lt.s32.totalorder %s961_s11, %s674_s19  ;;  %p677_p11 = scmp.lt.s32.totalorder %s675_s25, %s669_s21 }
  0x67   : > { %v285_v28 = vsel %vm284_vm2, %v283_v25, %v282_v27  ;;  %p672_p8 = pneg %p671_p6 }
  0x68   : > { %v288_v29 = vsel %vm287_vm3, %v286_v26, %v285_v28  ;;  %p678_p0 = por %p677_p11, %p676_p12 }
  0x69   : > { %523 = vmatmul.mubr.msk.f32.vlgmr.msra.gmra.mrb[0].mxu0 %vm289_vm4, %v288_v29 }
  0x6a   : > { %p679_p5 = pnand %p678_p0, %p672_p8 }
 0x13c   : > { %v358_v31 = vpop.f32.mrb[0].mxu0 }
 0x13d   : > { %v362_v32 = vadd.f32 %v358_v31, %v271_v30  ;;  %v524_v33 = vpop.f32.mrb[1].mxu0 }
 0x13f   : > { %363 = vst [vmem:[#allocation2] sm:$0xf] %v362_v32 }
 0x146   : > { %v367_v35 = vld [vmem:[#allocation2] sm:$0xf] }
 0x147   : > { %v375_v36 = vadd.f32 %v503_v34, %v367_v35 }
 0x149   : > { %376 = vst [vmem:[%s239_s10] sm:$0xf] %v375_v36 }
 0x14a   : > { %682 = shalt.err (!%p679_p5)
}
 0x14b   : > { %s683_s27 = scalar_lea.hbm %s959_s7, 64  ;;  %s687_s6 = scalar_lea.hbm %s1011_s3, 128 }
 0x14c   : > { %p684_p9 = scmp.ne.s32.totalorder %s959_s7, %s683_s27  ;;  %p688_p3 = scmp.lt.u32.totalorder %s959_s7, %s1011_s3 }
 0x14d   : > { %p689_p7 = scmp.lt.u32.totalorder %s687_s6, %s683_s27  ;;  %p691_p13 = scmp.lt.u32.totalorder %s683_s27, %s959_s7 }
 0x14e   : > { %p685_p1 = pnand %p684_p9, %p883_p10 }
 0x14f   : > { %p690_p4 = por %p689_p7, %p688_p3 }
 0x150   : > { %p686_p2 = pneg %p685_p1 }
 0x151   : > { %p692_p6 = por %p691_p13, %p690_p4 }
 0x153   : > { %p693_p8 = pnand %p692_p6, %p686_p2 }
 0x155   : > { %696 = shalt.err (!%p693_p8)
}
 0x156   : > { %537 = dma.vmem_to_hbm [thread:$0]  (%p883_p10), %s961_s11, 64, %s959_s7, %s378_s8  }
 0x157 PF: > { %s404_s24 = sand.u32 1, %s735_s12   ;;  %p1029_p12 = scmp.ne.s32.totalorder %s1019_s23, 0 }
 0x158   : > { %p1030_p11 = scmp.ge.s32.totalorder %s755_s17, 2  ;;  %s405_s9 = scalar_lea.sflag [#allocation5], %s404_s24 }
 0x15a   : > { %p548_p0 = pnand %p1030_p11, %p1029_p12 }
 0x15c   : > { %730 = dma.done.wait (!%p548_p0), %s405_s9, 64  }
 0x15d   : > { %732 = vsyncadd (!%p548_p0), %s405_s9, 4294967232  ;;  %s20_s17 = sadd.s32 1, %s755_s17   ;;  %s1031_s12 = smov %s739_s13 }
 0x15e   : > { %p17_p5 = scmp.ge.s32.totalorder %s20_s17, 4   ;;  %s1032_s13 = smov %s743_s14 }
 0x15f   : > { %s1033_s14 = smov %s892_s5  ;;  %s1034_s15 = smov %s751_s16 }
 0x160   : > { %s1035_s16 = smov %s1037_s28  ;;  %19 = sbr.rel (!%p17_p5) target bundleno = 7 (0x7), region = 90 }
 0x167   :  { %410 = vsyncpa [#allocation4], 1 }
 0x168   :  { %412 = vsyncpa [#allocation4 + $0x1], 1 }
 0x169   :  { %413 = vsyncpa [#allocation7], 1 }
 0x16a   :  { %414 = vsyncpa [#allocation5], 1 }
 0x16b   :  { %416 = vsyncpa [#allocation5 + $0x1], 1 }

</bundles_post_ra>
